<compile_context>
chip_gen: v5e
topology: v5e:2x2
jax: 0.10.0
libtpu: 0.0.40
codegen_flags: <defaults>
</compile_context>

<pallas_src>
import functools

import jax
import jax.numpy as jnp
from jax.experimental import pallas as pl
from jax.experimental.pallas import tpu as pltpu

_LANES = 128
_LOGITS_BLOCK_BUDGET = 2 * 1024 * 1024   # ~2 MiB of logits per pipelined block
_MAX_TILE_ROWS = 2048                    # bound targets/acc block size
_VREG_ARRAY_BUDGET = 40                  # live (8,128)-f32 vreg budget / chunk


def _focal_ce_kernel(logits_ref, tgt_ref, out_ref, *,
                     num_classes, hw, n_k, tile_rows, chunk_rows,
                     cache_classes, needs_mask, inner_unroll):
    """Accumulates per-position log softmax(x)[target] into out_ref.

    logits_ref: (1, C, tile_rows, 128) block, native layout; cast per chunk.
    tgt_ref:    (1, tile_rows, 128) int32 block.
    out_ref:    (1, 1, chunk_rows, 128) f32 partial-sum accumulator that stays
                resident across the kk (reduction) grid axis.
    """
    s_id = pl.program_id(1)
    kk = pl.program_id(2)
    global_k = s_id * pl.num_programs(2) + kk     # unclamped spatial block id

    @pl.when(kk == 0)
    def _():
        out_ref[...] = jnp.zeros_like(out_ref)

    n_chunks = tile_rows // chunk_rows

    def chunk_logpt(r0, masked):
        t = tgt_ref[0, pl.ds(r0, chunk_rows), :]            # (cr, 128) int32

        if cache_classes:
            xs = [logits_ref[0, c, pl.ds(r0, chunk_rows), :].astype(jnp.float32)
                  for c in range(num_classes)]
            load = lambda c: xs[c]                          # cast once, reuse
        else:
            load = lambda c: logits_ref[
                0, c, pl.ds(r0, chunk_rows), :].astype(jnp.float32)

        # Per-position max over classes (pure VPU, no cross-lane reductions).
        m = load(0)
        for c in range(1, num_classes):
            m = jnp.maximum(m, load(c))

        # sum_c exp(x_c - m) and the target-class logit via compare+select.
        ssum = jnp.zeros_like(m)
        tgt_logit = jnp.zeros_like(m)
        for c in range(num_classes):
            xc = load(c)
            ssum = ssum + jnp.exp(xc - m)
            tgt_logit = jnp.where(t == c, xc, tgt_logit)

        logpt = tgt_logit - m - jnp.log(ssum)               # (cr, 128)

        if masked:
            row = jax.lax.broadcasted_iota(jnp.int32, (chunk_rows, _LANES), 0)
            lane = jax.lax.broadcasted_iota(jnp.int32, (chunk_rows, _LANES), 1)
            idx = (global_k * tile_rows + r0 + row) * _LANES + lane
            logpt = jnp.where(idx < hw, logpt, 0.0)
        return logpt

    def tile_partial(masked):
        if n_chunks == 1:
            return chunk_logpt(0, masked)                   # fully static path

        def body(ci, carry):
            r0 = pl.multiple_of(ci * chunk_rows, 8)         # chunk_rows % 8 == 0
            return carry + chunk_logpt(r0, masked)

        init = jnp.zeros((chunk_rows, _LANES), jnp.float32)
        return jax.lax.fori_loop(0, n_chunks, body, init, unroll=inner_unroll)

    if not needs_mask:
        out_ref[0, 0] += tile_partial(False)
    elif n_k == 1:
        out_ref[0, 0] += tile_partial(True)
    else:
        # Only the final (and any clamped overflow) spatial tile needs masking.
        @pl.when(global_k < n_k - 1)
        def _():
            out_ref[0, 0] += tile_partial(False)

        @pl.when(global_k >= n_k - 1)
        def _():
            out_ref[0, 0] += tile_partial(True)


def _tile_config(num_classes, rows, itemsize):
    """Static tiling decisions: (tile_rows, chunk_rows, cache_classes, unroll)."""
    if rows <= 8:
        tr = max(rows, 1)
        return tr, tr, num_classes <= 32, True

    cache_classes = num_classes <= 32
    live_arrays = (num_classes if cache_classes else 2) + 5  # xs/m/sum/tgt/t/carry
    chunk_rows = max(8, min(32, (_VREG_ARRAY_BUDGET // live_arrays) * 8))

    bytes_per_row = num_classes * _LANES * itemsize
    budget_rows = (_LOGITS_BLOCK_BUDGET // bytes_per_row) // chunk_rows * chunk_rows
    budget_rows = max(chunk_rows, min(budget_rows, _MAX_TILE_ROWS))

    n_k = pl.cdiv(rows, budget_rows)
    tile_rows = pl.cdiv(pl.cdiv(rows, n_k), chunk_rows) * chunk_rows  # balanced

    n_chunks = tile_rows // chunk_rows
    unroll = True if n_chunks <= 8 else 2
    return tile_rows, chunk_rows, cache_classes, unroll


def _ce_logpt_sum(logits, targets):
    """logits (N, C, HW) float, targets (N, HW) int32 -> scalar sum over all
    (batch, spatial) positions of log softmax(logits)[target]."""
    N, C, HW = logits.shape
    itemsize = jnp.dtype(logits.dtype).itemsize
    rows = pl.cdiv(HW, _LANES)
    hw_lane = rows * _LANES

    if hw_lane != HW:
        # Lane-alignment pad only (next multiple of 128); ragged row blocks are
        # handled by Pallas partial edge blocks + the in-kernel mask.
        logits = jnp.pad(logits, ((0, 0), (0, 0), (0, hw_lane - HW)))
        targets = jnp.pad(targets, ((0, 0), (0, hw_lane - HW)))

    tile_rows, chunk_rows, cache_classes, inner_unroll = _tile_config(
        C, rows, itemsize)
    n_k = pl.cdiv(rows, tile_rows)

    # Spatial split so a single-image (or odd-batch) call still feeds both v7x
    # TensorCores; no-op on v5e/v6e (1 TC) or when N already balances 2 cores.
    S = 2 if (n_k >= 2 and N % 2 == 1) else 1
    KK = pl.cdiv(n_k, S)
    needs_mask = (S * KK * tile_rows * _LANES) != HW

    logits_4d = logits.reshape(N, C, rows, _LANES)   # free reshape, no transpose
    tgts_3d = targets.reshape(N, rows, _LANES)

    kernel = functools.partial(
        _focal_ce_kernel, num_classes=C, hw=HW, n_k=n_k, tile_rows=tile_rows,
        chunk_rows=chunk_rows, cache_classes=cache_classes,
        needs_mask=needs_mask, inner_unroll=inner_unroll)

    def logits_map(n, s, kk):
        return (n, 0, jnp.minimum(s * KK + kk, n_k - 1), 0)

    def tgt_map(n, s, kk):
        return (n, jnp.minimum(s * KK + kk, n_k - 1), 0)

    def out_map(n, s, kk):
        return (n, s, 0, 0)

    cost = pl.CostEstimate(
        flops=int(6 * N * HW * C),
        transcendentals=int(N * HW * (C + 1)),
        bytes_accessed=int(N * C * hw_lane * itemsize + N * hw_lane * 4
                           + N * S * chunk_rows * _LANES * 4),
    )

    out = pl.pallas_call(
        kernel,
        out_shape=jax.ShapeDtypeStruct((N, S, chunk_rows, _LANES), jnp.float32),
        grid_spec=pltpu.PrefetchScalarGridSpec(
            num_scalar_prefetch=0,
            grid=(N, S, KK),
            in_specs=[
                pl.BlockSpec((1, C, tile_rows, _LANES), logits_map),
                pl.BlockSpec((1, tile_rows, _LANES), tgt_map),
            ],
            out_specs=pl.BlockSpec((1, 1, chunk_rows, _LANES), out_map),
        ),
        compiler_params=pltpu.CompilerParams(
            dimension_semantics=("parallel", "parallel", "arbitrary"),
            vmem_limit_bytes=32 * 1024 * 1024),
        cost_estimate=cost,
    )(logits_4d, tgts_3d)
    return jnp.sum(out)


@functools.partial(jax.jit, static_argnames=("gamma", "size_average"))
def focal_loss_2d(inp, target, weight=None, *, gamma=0.0, size_average=True):
    """JAX/Pallas equivalent of FocalLoss2d.forward.

    inp:    (N, C, H, W) float logits (f32 or bf16; bf16 halves HBM traffic)
    target: (N, H, W)    int class indices in [0, C)
    weight: (C,)         kept for module parity; unused (the reference never
                         passes it to cross_entropy).
    """
    del weight  # unused in the reference forward pass
    N, C, H, W = inp.shape
    HW = H * W
    logits = inp.reshape(N, C, HW)                     # no transpose
    tgts = target.reshape(N, HW).astype(jnp.int32)

    total = _ce_logpt_sum(logits, tgts)                # Pallas hot path
    logpt = total / jnp.float32(N * HW)                # = -cross_entropy(mean)
    pt = jnp.exp(logpt)
    loss = -((1.0 - pt) ** jnp.float32(gamma)) * logpt
    # size_average: mean of a scalar == scalar; sum of a scalar == scalar.
    return loss if size_average else loss


def _reference_loss(x, tgt, gamma):
    N, C = x.shape[0], x.shape[1]
    logits_2d = jnp.transpose(x.reshape(N, C, -1), (0, 2, 1)).reshape(-1, C)
    t1d = tgt.reshape(-1)
    logp = jax.nn.log_softmax(logits_2d.astype(jnp.float32), axis=-1)
    logpt = jnp.mean(logp[jnp.arange(logits_2d.shape[0]), t1d])
    pt = jnp.exp(logpt)
    return -((1.0 - pt) ** gamma) * logpt


if __name__ == "__main__":
    key = jax.random.PRNGKey(0)
    k1, k2, k3, k4 = jax.random.split(key, 4)

    # Case 1: small, lane-aligned spatial extent.
    N, C, H, W = 2, 4, 16, 16
    x = jax.random.normal(k1, (N, C, H, W), dtype=jnp.float32)
    tgt = jax.random.randint(k2, (N, H, W), 0, C, dtype=jnp.int32)
    class_weight = jnp.ones((C,), dtype=jnp.float32)   # parity only; unused
    loss = focal_loss_2d(x, tgt, class_weight, gamma=2.0, size_average=True)
    jax.block_until_ready(loss)
    loss_ref = _reference_loss(x, tgt, 2.0)
    assert jnp.allclose(loss, loss_ref, atol=1e-5, rtol=1e-5), (loss, loss_ref)

    # Case 2: ragged spatial extent (HW % 128 != 0) exercising the masked path.
    N2, C2, H2, W2 = 3, 5, 15, 15
    x2 = jax.random.normal(k3, (N2, C2, H2, W2), dtype=jnp.float32)
    tgt2 = jax.random.randint(k4, (N2, H2, W2), 0, C2, dtype=jnp.int32)
    w2 = jnp.ones((C2,), dtype=jnp.float32)
    loss2 = focal_loss_2d(x2, tgt2, w2, gamma=2.0, size_average=True)
    jax.block_until_ready(loss2)
    loss2_ref = _reference_loss(x2, tgt2, 2.0)
    assert jnp.allclose(loss2, loss2_ref, atol=1e-5, rtol=1e-5), (loss2, loss2_ref)

    print("KERNEL_OK")
</pallas_src>

<mosaic_0001>
module attributes {stable_mosaic.version = 11 : i64} {
  func.func @_focal_ce_kernel(%arg0: i32, %arg1: i32, %arg2: i32, %arg3: memref<1x4x2x128xf32, #tpu.memory_space<vmem>>, %arg4: memref<1x2x128xi32, #tpu.memory_space<vmem>>, %arg5: memref<1x1x2x128xf32, #tpu.memory_space<vmem>>) attributes {dimension_semantics = [#tpu.dimension_semantics<parallel>, #tpu.dimension_semantics<parallel>, #tpu.dimension_semantics<arbitrary>], iteration_bounds = array<i64: 2, 1, 1>, scalar_prefetch = 0 : i64, scratch_operands = 0 : i64, tpu.core_type = #tpu.core_type<tc>, window_params = [{transform_indices = @transform_0, window_bounds = array<i64: 1, 4, 2, 128>}, {transform_indices = @transform_1, window_bounds = array<i64: 1, 2, 128>}, {transform_indices = @transform_2, window_bounds = array<i64: 1, 1, 2, 128>}]} {
    %c0_i32 = arith.constant 0 : i32
    %0 = arith.cmpi eq, %arg2, %c0_i32 : i32
    %1 = arith.extui %0 : i1 to i32
    %c0_i32_0 = arith.constant 0 : i32
    %2 = arith.cmpi ne, %1, %c0_i32_0 : i32
    scf.if %2 {
      %cst_26 = arith.constant 0.000000e+00 : f32
      %51 = vector.broadcast %cst_26 : f32 to vector<1x1x2x128xf32>
      %c0_27 = arith.constant 0 : index
      %c0_28 = arith.constant 0 : index
      %c0_29 = arith.constant 0 : index
      %c0_30 = arith.constant 0 : index
      %52 = vector.load %arg5[%c0_27, %c0_28, %c0_29, %c0_30] : memref<1x1x2x128xf32, #tpu.memory_space<vmem>>, vector<1x1x2x128xf32>
      tpu.vector_store %arg5[%c0_27, %c0_28, %c0_29, %c0_30], %51 {strides = array<i32>} : memref<1x1x2x128xf32, #tpu.memory_space<vmem>>, vector<1x1x2x128xf32>,
    } else {
    }
    %c0 = arith.constant 0 : index
    %c0_1 = arith.constant 0 : index
    %c0_2 = arith.constant 0 : index
    %c0_3 = arith.constant 0 : index
    %3 = vector.load %arg5[%c0, %c0_1, %c0_2, %c0_3] : memref<1x1x2x128xf32, #tpu.memory_space<vmem>>, vector<1x1x2x128xf32>
    %4 = vector.shape_cast %3 : vector<1x1x2x128xf32> to vector<2x128xf32>
    %c0_4 = arith.constant 0 : index
    %c0_5 = arith.constant 0 : index
    %c0_6 = arith.constant 0 : index
    %5 = vector.load %arg4[%c0_4, %c0_5, %c0_6] : memref<1x2x128xi32, #tpu.memory_space<vmem>>, vector<1x2x128xi32>
    %6 = vector.shape_cast %5 : vector<1x2x128xi32> to vector<2x128xi32>
    %c0_7 = arith.constant 0 : index
    %c0_8 = arith.constant 0 : index
    %c0_9 = arith.constant 0 : index
    %c0_10 = arith.constant 0 : index
    %7 = vector.load %arg3[%c0_7, %c0_8, %c0_9, %c0_10] : memref<1x4x2x128xf32, #tpu.memory_space<vmem>>, vector<1x1x2x128xf32>
    %8 = vector.shape_cast %7 : vector<1x1x2x128xf32> to vector<2x128xf32>
    %c0_11 = arith.constant 0 : index
    %c1 = arith.constant 1 : index
    %c0_12 = arith.constant 0 : index
    %c0_13 = arith.constant 0 : index
    %9 = vector.load %arg3[%c0_11, %c1, %c0_12, %c0_13] : memref<1x4x2x128xf32, #tpu.memory_space<vmem>>, vector<1x1x2x128xf32>
    %10 = vector.shape_cast %9 : vector<1x1x2x128xf32> to vector<2x128xf32>
    %c0_14 = arith.constant 0 : index
    %c2 = arith.constant 2 : index
    %c0_15 = arith.constant 0 : index
    %c0_16 = arith.constant 0 : index
    %11 = vector.load %arg3[%c0_14, %c2, %c0_15, %c0_16] : memref<1x4x2x128xf32, #tpu.memory_space<vmem>>, vector<1x1x2x128xf32>
    %12 = vector.shape_cast %11 : vector<1x1x2x128xf32> to vector<2x128xf32>
    %c0_17 = arith.constant 0 : index
    %c3 = arith.constant 3 : index
    %c0_18 = arith.constant 0 : index
    %c0_19 = arith.constant 0 : index
    %13 = vector.load %arg3[%c0_17, %c3, %c0_18, %c0_19] : memref<1x4x2x128xf32, #tpu.memory_space<vmem>>, vector<1x1x2x128xf32>
    %14 = vector.shape_cast %13 : vector<1x1x2x128xf32> to vector<2x128xf32>
    %15 = arith.maximumf %8, %10 : vector<2x128xf32>
    %16 = arith.maximumf %15, %12 : vector<2x128xf32>
    %17 = arith.maximumf %16, %14 : vector<2x128xf32>
    %cst = arith.constant 0.000000e+00 : f32
    %18 = vector.broadcast %cst : f32 to vector<2x128xf32>
    %cst_20 = arith.constant 0.000000e+00 : f32
    %19 = vector.broadcast %cst_20 : f32 to vector<2x128xf32>
    %20 = arith.subf %8, %17 : vector<2x128xf32>
    %21 = math.exp %20 : vector<2x128xf32>
    %22 = arith.addf %18, %21 : vector<2x128xf32>
    %c0_i32_21 = arith.constant 0 : i32
    %23 = vector.broadcast %c0_i32_21 : i32 to vector<2x128xi32>
    %24 = arith.cmpi eq, %6, %23 : vector<2x128xi32>
    %25 = arith.select %24, %8, %19 : vector<2x128xi1>, vector<2x128xf32>
    %26 = arith.subf %10, %17 : vector<2x128xf32>
    %27 = math.exp %26 : vector<2x128xf32>
    %28 = arith.addf %22, %27 : vector<2x128xf32>
    %c1_i32 = arith.constant 1 : i32
    %29 = vector.broadcast %c1_i32 : i32 to vector<2x128xi32>
    %30 = arith.cmpi eq, %6, %29 : vector<2x128xi32>
    %31 = arith.select %30, %10, %25 : vector<2x128xi1>, vector<2x128xf32>
    %32 = arith.subf %12, %17 : vector<2x128xf32>
    %33 = math.exp %32 : vector<2x128xf32>
    %34 = arith.addf %28, %33 : vector<2x128xf32>
    %c2_i32 = arith.constant 2 : i32
    %35 = vector.broadcast %c2_i32 : i32 to vector<2x128xi32>
    %36 = arith.cmpi eq, %6, %35 : vector<2x128xi32>
    %37 = arith.select %36, %12, %31 : vector<2x128xi1>, vector<2x128xf32>
    %38 = arith.subf %14, %17 : vector<2x128xf32>
    %39 = math.exp %38 : vector<2x128xf32>
    %40 = arith.addf %34, %39 : vector<2x128xf32>
    %c3_i32 = arith.constant 3 : i32
    %41 = vector.broadcast %c3_i32 : i32 to vector<2x128xi32>
    %42 = arith.cmpi eq, %6, %41 : vector<2x128xi32>
    %43 = arith.select %42, %14, %37 : vector<2x128xi1>, vector<2x128xf32>
    %44 = arith.subf %43, %17 : vector<2x128xf32>
    %45 = math.log %40 : vector<2x128xf32>
    %46 = arith.subf %44, %45 : vector<2x128xf32>
    %47 = arith.addf %4, %46 : vector<2x128xf32>
    %c0_22 = arith.constant 0 : index
    %c0_23 = arith.constant 0 : index
    %c0_24 = arith.constant 0 : index
    %c0_25 = arith.constant 0 : index
    %48 = vector.load %arg5[%c0_22, %c0_23, %c0_24, %c0_25] : memref<1x1x2x128xf32, #tpu.memory_space<vmem>>, vector<1x1x2x128xf32>
    %49 = vector.shape_cast %48 : vector<1x1x2x128xf32> to vector<2x128xf32>
    %50 = vector.shape_cast %47 : vector<2x128xf32> to vector<1x1x2x128xf32>
    tpu.vector_store %arg5[%c0_22, %c0_23, %c0_24, %c0_25], %50 {strides = array<i32>} : memref<1x1x2x128xf32, #tpu.memory_space<vmem>>, vector<1x1x2x128xf32>,
    return
  }
  func.func @transform_0(%arg0: i32, %arg1: i32, %arg2: i32) -> (i32, i32, i32, i32) {
    %c1_i32 = arith.constant 1 : i32
    %0 = arith.muli %arg1, %c1_i32 : i32
    %1 = arith.addi %0, %arg2 : i32
    %c0_i32 = arith.constant 0 : i32
    %2 = arith.minsi %1, %c0_i32 : i32
    %c0_i32_0 = arith.constant 0 : i32
    %c0_i32_1 = arith.constant 0 : i32
    %c0_i32_2 = arith.constant 0 : i32
    return %arg0, %c0_i32_0, %2, %c0_i32_1 : i32, i32, i32, i32
  }
  func.func @transform_1(%arg0: i32, %arg1: i32, %arg2: i32) -> (i32, i32, i32) {
    %c1_i32 = arith.constant 1 : i32
    %0 = arith.muli %arg1, %c1_i32 : i32
    %1 = arith.addi %0, %arg2 : i32
    %c0_i32 = arith.constant 0 : i32
    %2 = arith.minsi %1, %c0_i32 : i32
    %c0_i32_0 = arith.constant 0 : i32
    %c0_i32_1 = arith.constant 0 : i32
    return %arg0, %2, %c0_i32_0 : i32, i32, i32
  }
  func.func @transform_2(%arg0: i32, %arg1: i32, %arg2: i32) -> (i32, i32, i32, i32) {
    %c0_i32 = arith.constant 0 : i32
    %c0_i32_0 = arith.constant 0 : i32
    %c0_i32_1 = arith.constant 0 : i32
    return %arg0, %arg1, %c0_i32, %c0_i32_0 : i32, i32, i32, i32
  }
}

</mosaic_0001>

<bundles_post_ra>
// kernel: focal_loss_2d.1
= control target key start
LH: loop header
LB: loop body
LE: loop exit
PB: predicated region body
PF: predicated region fallthrough
CT: control target
= control target key end

     0   :  { %s482_s9 = smov 0   ;;  %s484_s10 = smov 0   ;;  %s523_s0 = inlined_call_operand.vmem [shape: f32[2,4,2,128], index: 0, kind: input, shape index: {}]   ;;  %s524_s1 = inlined_call_operand.vmem [shape: s32[2,2,128], index: 1, kind: input, shape index: {}]   ;;  %s525_s2 = inlined_call_operand.vmem [shape: f32[2,1,2,128], index: 2, kind: output, shape index: {}]  }
   0x1   :  { %s486_s11 = smov 0  }
   0x2 LB: > { %s31_s12 = sadd.s32 1, %s460_s10  ;;  %p396_p0 = scmp.ge.s32.totalorder %s464_s11, 1  ;;  %s464_s11 = sphi %s486_s11, %s12_s11   ;;  %s460_s10 = sphi %s484_s10, %s527_s10   ;;  %s456_s9 = sphi %s482_s9, %s526_s9  }
   0x3   : > { %p33_p1 = scmp.ge.s32.totalorder %s31_s12, 2  ;;  %p176_p2 = scmp.lt.s32.totalorder %s464_s11, 3 }
   0x5   : > { %s529_s12 = smov (%p33_p1, %s31_s12), 0  ;;  %p177_p3 = pnand %p396_p0, %p176_p2 }
   0x6   : > { %p219_p4 = scmp.lt.s32.totalorder (!%p177_p3), %s456_s9, 1 }
   0x7   : > { %180 = sbr.rel (%p177_p3) target bundleno = 54 (0x36), region = 28 }
   0xc   : > { %s531_s9 = smov (!%p219_p4, %s456_s9), 1  ;;  %v466_v2 = vmov 0.0  }
   0xd   : > { %s406_s13 = sshll.u32 %s531_s9, 3  ;;  %s399_s17 = sshll.u32 %s531_s9, 1 }
   0xe   : > { %s226_s16 = scalar_lea.vmem %s523_s0, %s406_s13  ;;  %s506_s20 = scalar_lea.vmem %s525_s2, %s399_s17 }
   0xf   : > { %v257_v0 = vld [vmem:[%s226_s16] sm:$0x3]  ;;  %v401_v1 = vld [vmem:[%s226_s16 + $0x2] sm:$0x3]  ;;  %254 = vst [vmem:[%s506_s20] sm:$0x3] %v466_v2  ;;  %s239_s23 = scalar_lea.vmem %s524_s1, %s399_s17 }
  0x10   : > { %v402_v3 = vld [vmem:[%s226_s16 + $0x4] sm:$0x3]  ;;  %v264_v4 = vmax.f32 %v257_v0, %v401_v1  ;;  %v403_v5 = vld [vmem:[%s226_s16 + $0x6] sm:$0x3]  ;;  %v256_v16 = vld [vmem:[%s239_s23] sm:$0x3] }
  0x11   : > { %vm271_vm0 = vcmp.eq.s32.totalorder %v256_v16, 0  ;;  %vm277_vm1 = vcmp.eq.s32.totalorder %v256_v16, 1  ;;  %vm283_vm2 = vcmp.eq.s32.totalorder %v256_v16, 2  ;;  %vm289_vm3 = vcmp.eq.s32.totalorder %v256_v16, 3 }
  0x12   : > { %v265_v6 = vmax.f32 %v264_v4, %v402_v3  ;;  %v272_v19 = vsel %vm271_vm0, %v257_v0, 0.0 }
  0x13   : > { %v278_v23 = vsel %vm277_vm1, %v401_v1, %v272_v19 }
  0x14   : > { %v266_v7 = vmax.f32 %v265_v6, %v403_v5  ;;  %v284_v26 = vsel %vm283_vm2, %v402_v3, %v278_v23 }
  0x15   : > { %v290_v27 = vsel %vm289_vm3, %v403_v5, %v284_v26 }
  0x16   : > { %v267_v8 = vsub.f32 %v257_v0, %v266_v7  ;;  %v273_v9 = vsub.f32 %v401_v1, %v266_v7  ;;  %v279_v10 = vsub.f32 %v402_v3, %v266_v7  ;;  %v285_v11 = vsub.f32 %v403_v5, %v266_v7  ;;  %v255_v31 = vld [vmem:[%s506_s20] sm:$0x3] }
  0x17   : > { %v291_v28 = vsub.f32 %v290_v27, %v266_v7 }
  0x18   : > { %v268_v12 = vmul.f32 1.442695, %v267_v8  ;;  %v274_v13 = vmul.f32 1.442695, %v273_v9  ;;  %v280_v14 = vmul.f32 1.442695, %v279_v10 }
  0x19   : > { %v286_v15 = vmul.f32 1.442695, %v285_v11 }
  0x1a   : > { %432 = vpow2.f32 %v268_v12 }
  0x1b   : > { %434 = vpow2.f32 %v274_v13 }
  0x1c   : > { %436 = vpow2.f32 %v280_v14 }
  0x1d   : > { %438 = vpow2.f32 %v286_v15 }
  0x20   : > { %v433_v17 = vpop.eup %432 }
  0x21   : > { %v435_v18 = vpop.eup %434 }
  0x22   : > { %v437_v20 = vpop.eup %436  ;;  %v276_v21 = vadd.f32 %v435_v18, %v433_v17 }
  0x23   : > { %v439_v22 = vpop.eup %438 }
  0x24   : > { %v282_v24 = vadd.f32 %v437_v20, %v276_v21 }
  0x26   : > { %v288_v25 = vadd.f32 %v439_v22, %v282_v24 }
  0x28   : > { %440 = vlog2.f32 %v288_v25 }
  0x2e   : > { %v441_v29 = vpop.eup %440 }
  0x2f   : > { %v293_v30 = vmul.f32 0.6931472, %v441_v29 }
  0x31   : > { %v294_v32 = vsub.f32 %v291_v28, %v293_v30 }
  0x33   : > { %v295_v33 = vadd.f32 %v294_v32, %v255_v31 }
  0x35   : > { %296 = vst [vmem:[%s506_s20] sm:$0x3] %v295_v33 }
  0x36 PF: > { %s12_s11 = sadd.s32 1, %s464_s11   ;;  %s526_s9 = smov %s460_s10 }
  0x37   : > { %p9_p5 = scmp.ge.s32.totalorder %s12_s11, 4   ;;  %s527_s10 = smov %s529_s12 }
  0x39   :  { %11 = sbr.rel (!%p9_p5) target bundleno = 2 (0x2), region = 68 }

</bundles_post_ra>
